<compile_context>
chip_gen: v7x
topology: tpu7x:2x2x1
jax: 0.10.0
libtpu: 0.0.40
codegen_flags: <defaults>
</compile_context>

<pallas_src>
import math
import functools

import jax
import jax.numpy as jnp
from jax.experimental import pallas as pl
from jax.experimental.pallas import tpu as pltpu


# ----------------------------- config ---------------------------------------
INPUT_DIM = 4
WIN_RANGE = 2
WIN_WIDTH = 2 * WIN_RANGE + 1          # 5
IN_FEATURES = INPUT_DIM * WIN_WIDTH    # 20
HIDDEN_DIM = 32
N_LAYERS = 2
LN_EPS = 1e-5

ACT_DTYPE = jnp.bfloat16               # x / weights on the wire
EXACT_GELU = True                      # PyTorch nn.GELU() default (erf form)


def _gelu(x, exact=EXACT_GELU):
    if exact:
        # exact erf formulation (matches torch.nn.GELU default)
        return 0.5 * x * (1.0 + jax.lax.erf(x * (1.0 / math.sqrt(2.0))))
    # opt-in tanh approximation (EUP path) -- deviates slightly from PyTorch
    return jax.nn.gelu(x, approximate=True)


# ----------------------------- kernel ---------------------------------------
def ffnn_kernel(x_ref,                 # (IN_FEATURES, tm)   bf16
                w_in_ref, b_in_ref,    # (H, IN), (H, 1)
                w12_ref, b12_ref,      # (L, 2H, H), (L, 2H, 1)   fused GLU
                ln_ref,                # (L, 2H, 1)  = [gamma ; beta]
                w_out_ref, b_out_ref,  # (OUT, H), (OUT, 1)
                o_ref,                 # (OUT, tm)  f32
                *, n_layers):
    x = x_ref[...]                                                  # bf16

    # input projection: (H, IN) @ (IN, tm) -> (H, tm), f32 accumulate
    h = jnp.dot(w_in_ref[...], x,
                preferred_element_type=jnp.float32) + b_in_ref[...]

    # stacked GLU + LayerNorm blocks (static unroll)
    for l in range(n_layers):
        # fused GLU matmul: one (2H, H) @ (H, tm) push instead of two
        ab = jnp.dot(w12_ref[l], h.astype(ACT_DTYPE),
                     preferred_element_type=jnp.float32) + b12_ref[l]
        a = ab[:HIDDEN_DIM, :]
        g = a * _gelu(ab[HIDDEN_DIM:, :])                            # GLU

        # LayerNorm over the feature (sublane) axis, f32
        mu = jnp.mean(g, axis=0, keepdims=True)
        d = g - mu
        var = jnp.mean(d * d, axis=0, keepdims=True)
        lngb = ln_ref[l]                                             # (2H, 1)
        h = (d * jax.lax.rsqrt(var + LN_EPS)
             * lngb[:HIDDEN_DIM, :] + lngb[HIDDEN_DIM:, :])

    # output projection: (OUT, H) @ (H, tm) -> (OUT, tm); lane-dense store
    out = jnp.dot(w_out_ref[...], h.astype(ACT_DTYPE),
                  preferred_element_type=jnp.float32) + b_out_ref[...]
    o_ref[...] = out.astype(o_ref.dtype)


# ----------------------------- wrapper ---------------------------------------
def ffnn_forward(x, params, *, tm=512):
    """x: (..., IN_FEATURES) float32 -> (..., INPUT_DIM) float32."""
    assert tm % 128 == 0, "row tile must be a multiple of 128 (lane axis)"
    (w_in, b_in, w12, b12, ln, w_out, b_out) = params

    lead = x.shape[:-1]
    rows = int(math.prod(lead)) if lead else 1
    x2 = x.reshape(rows, IN_FEATURES)

    # Pick an effective tile: as big as possible, but keep >=2 grid steps when
    # there is enough work so the "parallel" axis can shard across both
    # TensorCores on v7x (single-TC v5e/v6e don't care).
    if rows > 128:
        tm_eff = max(128, min(tm, 128 * ((rows - 1) // 128)))
    else:
        tm_eff = 128
    rows_p = ((rows + tm_eff - 1) // tm_eff) * tm_eff

    # Layout plumbing outside the kernel: bf16, pad rows, rows -> lane axis.
    xb = x2.astype(ACT_DTYPE)
    if rows_p != rows:
        xb = jnp.pad(xb, ((0, rows_p - rows), (0, 0)))
    x_t = xb.T                                                   # (IN, rows_p)

    full = lambda shape: pl.BlockSpec(shape, lambda i: tuple(0 for _ in shape))

    flops = 2 * rows_p * (IN_FEATURES * HIDDEN_DIM
                          + N_LAYERS * HIDDEN_DIM * 2 * HIDDEN_DIM
                          + HIDDEN_DIM * INPUT_DIM)
    transcendentals = rows_p * N_LAYERS * HIDDEN_DIM
    param_bytes = sum(int(p.size) * p.dtype.itemsize for p in params)
    bytes_accessed = (int(x_t.size) * x_t.dtype.itemsize
                      + rows_p * INPUT_DIM * 4 + param_bytes)

    kernel = functools.partial(ffnn_kernel, n_layers=N_LAYERS)
    out_t = pl.pallas_call(
        kernel,
        out_shape=jax.ShapeDtypeStruct((INPUT_DIM, rows_p), jnp.float32),
        grid_spec=pltpu.PrefetchScalarGridSpec(
            num_scalar_prefetch=0,
            grid=(rows_p // tm_eff,),
            in_specs=[
                pl.BlockSpec((IN_FEATURES, tm_eff), lambda i: (0, i)),  # x (rows tiled on lanes)
                full(w_in.shape), full(b_in.shape),
                full(w12.shape), full(b12.shape),
                full(ln.shape),
                full(w_out.shape), full(b_out.shape),
            ],
            out_specs=pl.BlockSpec((INPUT_DIM, tm_eff), lambda i: (0, i)),
        ),
        compiler_params=pltpu.CompilerParams(
            dimension_semantics=("parallel",)),
        cost_estimate=pl.CostEstimate(
            flops=int(flops),
            transcendentals=int(transcendentals),
            bytes_accessed=int(bytes_accessed)),
    )(x_t, w_in, b_in, w12, b12, ln, w_out, b_out)

    out = out_t.T[:rows]                                         # (rows, OUT)
    return out.reshape(lead + (INPUT_DIM,))


# ----------------------------- params ---------------------------------------
def init_params(key):
    """nn.Linear-style U(-1/sqrt(fan_in), +1/sqrt(fan_in)) init.

    Weights are in torch (out_features, in_features) orientation (the kernel
    computes W @ x_T), with the two GLU linears fused along the out axis.
    """
    keys = jax.random.split(key, 4 + 4 * N_LAYERS)
    kit = iter(keys)

    def lin(fan_in, fan_out):
        bound = 1.0 / math.sqrt(fan_in)
        w = jax.random.uniform(next(kit), (fan_out, fan_in), jnp.float32, -bound, bound)
        b = jax.random.uniform(next(kit), (fan_out,), jnp.float32, -bound, bound)
        return w, b

    w_in, b_in = lin(IN_FEATURES, HIDDEN_DIM)

    w12_l, b12_l = [], []
    for _ in range(N_LAYERS):
        w1, b1 = lin(HIDDEN_DIM, HIDDEN_DIM)
        w2, b2 = lin(HIDDEN_DIM, HIDDEN_DIM)
        w12_l.append(jnp.concatenate([w1, w2], axis=0))          # (2H, H)
        b12_l.append(jnp.concatenate([b1, b2], axis=0))          # (2H,)
    w12 = jnp.stack(w12_l)                                       # (L, 2H, H)
    b12 = jnp.stack(b12_l)[..., None]                            # (L, 2H, 1)

    # LayerNorm params packed [gamma ; beta] per layer (torch init: ones/zeros)
    ln = jnp.concatenate([jnp.ones((N_LAYERS, HIDDEN_DIM), jnp.float32),
                          jnp.zeros((N_LAYERS, HIDDEN_DIM), jnp.float32)],
                         axis=1)[..., None]                      # (L, 2H, 1)

    w_out, b_out = lin(HIDDEN_DIM, INPUT_DIM)

    return (w_in.astype(ACT_DTYPE), b_in[:, None],               # biases stay f32
            w12.astype(ACT_DTYPE), b12,
            ln,
            w_out.astype(ACT_DTYPE), b_out[:, None])


# ----------------------------- reference ------------------------------------
def ffnn_reference(x, params):
    """Pure-JAX reference with identical math / dtypes (row-major layout)."""
    (w_in, b_in, w12, b12, ln, w_out, b_out) = params
    h = jnp.dot(x.astype(w_in.dtype), w_in.T,
                preferred_element_type=jnp.float32) + b_in[:, 0]
    for l in range(N_LAYERS):
        ab = jnp.dot(h.astype(w12.dtype), w12[l].T,
                     preferred_element_type=jnp.float32) + b12[l][:, 0]
        a, b = ab[..., :HIDDEN_DIM], ab[..., HIDDEN_DIM:]
        g = a * _gelu(b)
        mu = jnp.mean(g, -1, keepdims=True)
        var = jnp.mean((g - mu) ** 2, -1, keepdims=True)
        gamma, beta = ln[l][:HIDDEN_DIM, 0], ln[l][HIDDEN_DIM:, 0]
        h = (g - mu) * jax.lax.rsqrt(var + LN_EPS) * gamma + beta
    return jnp.dot(h.astype(w_out.dtype), w_out.T,
                   preferred_element_type=jnp.float32) + b_out[:, 0]


# ----------------------------- main ------------------------------------------
if __name__ == "__main__":
    key = jax.random.PRNGKey(0)
    k_x, k_p = jax.random.split(key)

    batch, seq = 2, 8                       # leading dims flatten into rows
    x = jax.random.normal(k_x, (batch, seq, IN_FEATURES), jnp.float32)
    params = init_params(k_p)

    out = jax.block_until_ready(ffnn_forward(x, params))
    ref = ffnn_reference(x, params)

    assert out.shape == (batch, seq, INPUT_DIM)
    err = float(jnp.max(jnp.abs(out - ref)))
    # bf16 weights/activations on both paths -> small residual rounding noise
    assert err < 2e-2, f"mismatch vs reference: max abs err {err}"

    print("KERNEL_OK")
</pallas_src>

<mosaic_0001>
module attributes {stable_mosaic.version = 11 : i64} {
  func.func @ffnn_kernel(%arg0: i32, %arg1: memref<20x128xbf16, #tpu.memory_space<vmem>>, %arg2: memref<32x20xbf16, #tpu.memory_space<vmem>>, %arg3: memref<32x1xf32, #tpu.memory_space<vmem>>, %arg4: memref<2x64x32xbf16, #tpu.memory_space<vmem>>, %arg5: memref<2x64x1xf32, #tpu.memory_space<vmem>>, %arg6: memref<2x64x1xf32, #tpu.memory_space<vmem>>, %arg7: memref<4x32xbf16, #tpu.memory_space<vmem>>, %arg8: memref<4x1xf32, #tpu.memory_space<vmem>>, %arg9: memref<4x128xf32, #tpu.memory_space<vmem>>) attributes {dimension_semantics = [#tpu.dimension_semantics<parallel>], iteration_bounds = array<i64: 1>, scalar_prefetch = 0 : i64, scratch_operands = 0 : i64, tpu.core_type = #tpu.core_type<tc>, window_params = [{transform_indices = @transform_0, window_bounds = array<i64: 20, 128>}, {pipeline_mode = #tpu.pipeline_mode<synchronous>, transform_indices = @transform_1, window_bounds = array<i64: 32, 20>}, {pipeline_mode = #tpu.pipeline_mode<synchronous>, transform_indices = @transform_2, window_bounds = array<i64: 32, 1>}, {pipeline_mode = #tpu.pipeline_mode<synchronous>, transform_indices = @transform_3, window_bounds = array<i64: 2, 64, 32>}, {pipeline_mode = #tpu.pipeline_mode<synchronous>, transform_indices = @transform_4, window_bounds = array<i64: 2, 64, 1>}, {pipeline_mode = #tpu.pipeline_mode<synchronous>, transform_indices = @transform_5, window_bounds = array<i64: 2, 64, 1>}, {pipeline_mode = #tpu.pipeline_mode<synchronous>, transform_indices = @transform_6, window_bounds = array<i64: 4, 32>}, {pipeline_mode = #tpu.pipeline_mode<synchronous>, transform_indices = @transform_7, window_bounds = array<i64: 4, 1>}, {transform_indices = @transform_8, window_bounds = array<i64: 4, 128>}]} {
    %c0 = arith.constant 0 : index
    %c0_0 = arith.constant 0 : index
    %0 = vector.load %arg1[%c0, %c0_0] : memref<20x128xbf16, #tpu.memory_space<vmem>>, vector<20x128xbf16>
    %c0_1 = arith.constant 0 : index
    %c0_2 = arith.constant 0 : index
    %1 = vector.load %arg2[%c0_1, %c0_2] : memref<32x20xbf16, #tpu.memory_space<vmem>>, vector<32x20xbf16>
    %cst = arith.constant dense<0.000000e+00> : vector<32x128xf32>
    %2 = tpu.matmul %1, %0, %cst {dimension_numbers = #tpu.dot_dimension_numbers<[1], [0], [0], [1], [0, 0, 1, 1], [], []>} : vector<32x20xbf16>, vector<20x128xbf16>, vector<32x128xf32> -> vector<32x128xf32>
    %c0_3 = arith.constant 0 : index
    %c0_4 = arith.constant 0 : index
    %3 = vector.load %arg3[%c0_3, %c0_4] : memref<32x1xf32, #tpu.memory_space<vmem>>, vector<32x1xf32>
    %4 = vector.broadcast %3 : vector<32x1xf32> to vector<32x128xf32>
    %5 = arith.addf %2, %4 : vector<32x128xf32>
    %c0_5 = arith.constant 0 : index
    %c0_6 = arith.constant 0 : index
    %c0_7 = arith.constant 0 : index
    %6 = vector.load %arg4[%c0_5, %c0_6, %c0_7] : memref<2x64x32xbf16, #tpu.memory_space<vmem>>, vector<1x64x32xbf16>
    %7 = vector.shape_cast %6 : vector<1x64x32xbf16> to vector<64x32xbf16>
    %8 = arith.truncf %5 : vector<32x128xf32> to vector<32x128xbf16>
    %cst_8 = arith.constant dense<0.000000e+00> : vector<64x128xf32>
    %9 = tpu.matmul %7, %8, %cst_8 {dimension_numbers = #tpu.dot_dimension_numbers<[1], [0], [0], [1], [0, 0, 1, 1], [], []>} : vector<64x32xbf16>, vector<32x128xbf16>, vector<64x128xf32> -> vector<64x128xf32>
    %c0_9 = arith.constant 0 : index
    %c0_10 = arith.constant 0 : index
    %c0_11 = arith.constant 0 : index
    %10 = vector.load %arg5[%c0_9, %c0_10, %c0_11] : memref<2x64x1xf32, #tpu.memory_space<vmem>>, vector<1x64x1xf32>
    %11 = vector.shape_cast %10 : vector<1x64x1xf32> to vector<64x1xf32>
    %12 = vector.broadcast %11 : vector<64x1xf32> to vector<64x128xf32>
    %13 = arith.addf %9, %12 : vector<64x128xf32>
    %14 = vector.extract_strided_slice %13 {offsets = [0, 0], sizes = [32, 128], strides = [1, 1]} : vector<64x128xf32> to vector<32x128xf32>
    %15 = vector.extract_strided_slice %13 {offsets = [32, 0], sizes = [32, 128], strides = [1, 1]} : vector<64x128xf32> to vector<32x128xf32>
    %cst_12 = arith.constant 5.000000e-01 : f32
    %16 = vector.broadcast %cst_12 : f32 to vector<32x128xf32>
    %17 = arith.mulf %16, %15 : vector<32x128xf32>
    %cst_13 = arith.constant 0.707106769 : f32
    %18 = vector.broadcast %cst_13 : f32 to vector<32x128xf32>
    %19 = arith.mulf %15, %18 : vector<32x128xf32>
    %20 = math.erf %19 : vector<32x128xf32>
    %cst_14 = arith.constant 1.000000e+00 : f32
    %21 = vector.broadcast %cst_14 : f32 to vector<32x128xf32>
    %22 = arith.addf %21, %20 : vector<32x128xf32>
    %23 = arith.mulf %17, %22 : vector<32x128xf32>
    %24 = arith.mulf %14, %23 : vector<32x128xf32>
    %cst_15 = arith.constant dense<0.000000e+00> : vector<128xf32>
    %25 = vector.multi_reduction <add>, %24, %cst_15 [0] : vector<32x128xf32> to vector<128xf32>
    %26 = vector.shape_cast %25 : vector<128xf32> to vector<1x128xf32>
    %cst_16 = arith.constant 3.200000e+01 : f32
    %27 = vector.broadcast %cst_16 : f32 to vector<1x128xf32>
    %28 = arith.divf %26, %27 : vector<1x128xf32>
    %29 = vector.broadcast %28 : vector<1x128xf32> to vector<32x128xf32>
    %30 = arith.subf %24, %29 : vector<32x128xf32>
    %31 = arith.mulf %30, %30 : vector<32x128xf32>
    %cst_17 = arith.constant dense<0.000000e+00> : vector<128xf32>
    %32 = vector.multi_reduction <add>, %31, %cst_17 [0] : vector<32x128xf32> to vector<128xf32>
    %33 = vector.shape_cast %32 : vector<128xf32> to vector<1x128xf32>
    %cst_18 = arith.constant 3.200000e+01 : f32
    %34 = vector.broadcast %cst_18 : f32 to vector<1x128xf32>
    %35 = arith.divf %33, %34 : vector<1x128xf32>
    %c0_19 = arith.constant 0 : index
    %c0_20 = arith.constant 0 : index
    %c0_21 = arith.constant 0 : index
    %36 = vector.load %arg6[%c0_19, %c0_20, %c0_21] : memref<2x64x1xf32, #tpu.memory_space<vmem>>, vector<1x64x1xf32>
    %37 = vector.shape_cast %36 : vector<1x64x1xf32> to vector<64x1xf32>
    %cst_22 = arith.constant 9.99999974E-6 : f32
    %38 = vector.broadcast %cst_22 : f32 to vector<1x128xf32>
    %39 = arith.addf %35, %38 : vector<1x128xf32>
    %40 = math.rsqrt %39 : vector<1x128xf32>
    %41 = vector.broadcast %40 : vector<1x128xf32> to vector<32x128xf32>
    %42 = arith.mulf %30, %41 : vector<32x128xf32>
    %43 = vector.extract_strided_slice %37 {offsets = [0, 0], sizes = [32, 1], strides = [1, 1]} : vector<64x1xf32> to vector<32x1xf32>
    %44 = vector.broadcast %43 : vector<32x1xf32> to vector<32x128xf32>
    %45 = arith.mulf %42, %44 : vector<32x128xf32>
    %46 = vector.extract_strided_slice %37 {offsets = [32, 0], sizes = [32, 1], strides = [1, 1]} : vector<64x1xf32> to vector<32x1xf32>
    %47 = vector.broadcast %46 : vector<32x1xf32> to vector<32x128xf32>
    %48 = arith.addf %45, %47 : vector<32x128xf32>
    %c1 = arith.constant 1 : index
    %c0_23 = arith.constant 0 : index
    %c0_24 = arith.constant 0 : index
    %49 = vector.load %arg4[%c1, %c0_23, %c0_24] : memref<2x64x32xbf16, #tpu.memory_space<vmem>>, vector<1x64x32xbf16>
    %50 = vector.shape_cast %49 : vector<1x64x32xbf16> to vector<64x32xbf16>
    %51 = arith.truncf %48 : vector<32x128xf32> to vector<32x128xbf16>
    %cst_25 = arith.constant dense<0.000000e+00> : vector<64x128xf32>
    %52 = tpu.matmul %50, %51, %cst_25 {dimension_numbers = #tpu.dot_dimension_numbers<[1], [0], [0], [1], [0, 0, 1, 1], [], []>} : vector<64x32xbf16>, vector<32x128xbf16>, vector<64x128xf32> -> vector<64x128xf32>
    %c1_26 = arith.constant 1 : index
    %c0_27 = arith.constant 0 : index
    %c0_28 = arith.constant 0 : index
    %53 = vector.load %arg5[%c1_26, %c0_27, %c0_28] : memref<2x64x1xf32, #tpu.memory_space<vmem>>, vector<1x64x1xf32>
    %54 = vector.shape_cast %53 : vector<1x64x1xf32> to vector<64x1xf32>
    %55 = vector.broadcast %54 : vector<64x1xf32> to vector<64x128xf32>
    %56 = arith.addf %52, %55 : vector<64x128xf32>
    %57 = vector.extract_strided_slice %56 {offsets = [0, 0], sizes = [32, 128], strides = [1, 1]} : vector<64x128xf32> to vector<32x128xf32>
    %58 = vector.extract_strided_slice %56 {offsets = [32, 0], sizes = [32, 128], strides = [1, 1]} : vector<64x128xf32> to vector<32x128xf32>
    %cst_29 = arith.constant 5.000000e-01 : f32
    %59 = vector.broadcast %cst_29 : f32 to vector<32x128xf32>
    %60 = arith.mulf %59, %58 : vector<32x128xf32>
    %cst_30 = arith.constant 0.707106769 : f32
    %61 = vector.broadcast %cst_30 : f32 to vector<32x128xf32>
    %62 = arith.mulf %58, %61 : vector<32x128xf32>
    %63 = math.erf %62 : vector<32x128xf32>
    %cst_31 = arith.constant 1.000000e+00 : f32
    %64 = vector.broadcast %cst_31 : f32 to vector<32x128xf32>
    %65 = arith.addf %64, %63 : vector<32x128xf32>
    %66 = arith.mulf %60, %65 : vector<32x128xf32>
    %67 = arith.mulf %57, %66 : vector<32x128xf32>
    %cst_32 = arith.constant dense<0.000000e+00> : vector<128xf32>
    %68 = vector.multi_reduction <add>, %67, %cst_32 [0] : vector<32x128xf32> to vector<128xf32>
    %69 = vector.shape_cast %68 : vector<128xf32> to vector<1x128xf32>
    %cst_33 = arith.constant 3.200000e+01 : f32
    %70 = vector.broadcast %cst_33 : f32 to vector<1x128xf32>
    %71 = arith.divf %69, %70 : vector<1x128xf32>
    %72 = vector.broadcast %71 : vector<1x128xf32> to vector<32x128xf32>
    %73 = arith.subf %67, %72 : vector<32x128xf32>
    %74 = arith.mulf %73, %73 : vector<32x128xf32>
    %cst_34 = arith.constant dense<0.000000e+00> : vector<128xf32>
    %75 = vector.multi_reduction <add>, %74, %cst_34 [0] : vector<32x128xf32> to vector<128xf32>
    %76 = vector.shape_cast %75 : vector<128xf32> to vector<1x128xf32>
    %cst_35 = arith.constant 3.200000e+01 : f32
    %77 = vector.broadcast %cst_35 : f32 to vector<1x128xf32>
    %78 = arith.divf %76, %77 : vector<1x128xf32>
    %c1_36 = arith.constant 1 : index
    %c0_37 = arith.constant 0 : index
    %c0_38 = arith.constant 0 : index
    %79 = vector.load %arg6[%c1_36, %c0_37, %c0_38] : memref<2x64x1xf32, #tpu.memory_space<vmem>>, vector<1x64x1xf32>
    %80 = vector.shape_cast %79 : vector<1x64x1xf32> to vector<64x1xf32>
    %cst_39 = arith.constant 9.99999974E-6 : f32
    %81 = vector.broadcast %cst_39 : f32 to vector<1x128xf32>
    %82 = arith.addf %78, %81 : vector<1x128xf32>
    %83 = math.rsqrt %82 : vector<1x128xf32>
    %84 = vector.broadcast %83 : vector<1x128xf32> to vector<32x128xf32>
    %85 = arith.mulf %73, %84 : vector<32x128xf32>
    %86 = vector.extract_strided_slice %80 {offsets = [0, 0], sizes = [32, 1], strides = [1, 1]} : vector<64x1xf32> to vector<32x1xf32>
    %87 = vector.broadcast %86 : vector<32x1xf32> to vector<32x128xf32>
    %88 = arith.mulf %85, %87 : vector<32x128xf32>
    %89 = vector.extract_strided_slice %80 {offsets = [32, 0], sizes = [32, 1], strides = [1, 1]} : vector<64x1xf32> to vector<32x1xf32>
    %90 = vector.broadcast %89 : vector<32x1xf32> to vector<32x128xf32>
    %91 = arith.addf %88, %90 : vector<32x128xf32>
    %c0_40 = arith.constant 0 : index
    %c0_41 = arith.constant 0 : index
    %92 = vector.load %arg7[%c0_40, %c0_41] : memref<4x32xbf16, #tpu.memory_space<vmem>>, vector<4x32xbf16>
    %93 = arith.truncf %91 : vector<32x128xf32> to vector<32x128xbf16>
    %cst_42 = arith.constant dense<0.000000e+00> : vector<4x128xf32>
    %94 = tpu.matmul %92, %93, %cst_42 {dimension_numbers = #tpu.dot_dimension_numbers<[1], [0], [0], [1], [0, 0, 1, 1], [], []>} : vector<4x32xbf16>, vector<32x128xbf16>, vector<4x128xf32> -> vector<4x128xf32>
    %c0_43 = arith.constant 0 : index
    %c0_44 = arith.constant 0 : index
    %95 = vector.load %arg8[%c0_43, %c0_44] : memref<4x1xf32, #tpu.memory_space<vmem>>, vector<4x1xf32>
    %96 = vector.broadcast %95 : vector<4x1xf32> to vector<4x128xf32>
    %97 = arith.addf %94, %96 : vector<4x128xf32>
    %c0_45 = arith.constant 0 : index
    %c0_46 = arith.constant 0 : index
    %98 = vector.load %arg9[%c0_45, %c0_46] : memref<4x128xf32, #tpu.memory_space<vmem>>, vector<4x128xf32>
    tpu.vector_store %arg9[%c0_45, %c0_46], %97 {strides = array<i32>} : memref<4x128xf32, #tpu.memory_space<vmem>>, vector<4x128xf32>,
    return
  }
  func.func @transform_0(%arg0: i32) -> (i32, i32) {
    %c0_i32 = arith.constant 0 : i32
    %c0_i32_0 = arith.constant 0 : i32
    return %c0_i32, %arg0 : i32, i32
  }
  func.func @transform_1(%arg0: i32) -> (i32, i32) {
    %c0_i32 = arith.constant 0 : i32
    %c0_i32_0 = arith.constant 0 : i32
    %c0_i32_1 = arith.constant 0 : i32
    return %c0_i32, %c0_i32_0 : i32, i32
  }
  func.func @transform_2(%arg0: i32) -> (i32, i32) {
    %c0_i32 = arith.constant 0 : i32
    %c0_i32_0 = arith.constant 0 : i32
    %c0_i32_1 = arith.constant 0 : i32
    return %c0_i32, %c0_i32_0 : i32, i32
  }
  func.func @transform_3(%arg0: i32) -> (i32, i32, i32) {
    %c0_i32 = arith.constant 0 : i32
    %c0_i32_0 = arith.constant 0 : i32
    %c0_i32_1 = arith.constant 0 : i32
    %c0_i32_2 = arith.constant 0 : i32
    return %c0_i32, %c0_i32_0, %c0_i32_1 : i32, i32, i32
  }
  func.func @transform_4(%arg0: i32) -> (i32, i32, i32) {
    %c0_i32 = arith.constant 0 : i32
    %c0_i32_0 = arith.constant 0 : i32
    %c0_i32_1 = arith.constant 0 : i32
    %c0_i32_2 = arith.constant 0 : i32
    return %c0_i32, %c0_i32_0, %c0_i32_1 : i32, i32, i32
  }
  func.func @transform_5(%arg0: i32) -> (i32, i32, i32) {
    %c0_i32 = arith.constant 0 : i32
    %c0_i32_0 = arith.constant 0 : i32
    %c0_i32_1 = arith.constant 0 : i32
    %c0_i32_2 = arith.constant 0 : i32
    return %c0_i32, %c0_i32_0, %c0_i32_1 : i32, i32, i32
  }
  func.func @transform_6(%arg0: i32) -> (i32, i32) {
    %c0_i32 = arith.constant 0 : i32
    %c0_i32_0 = arith.constant 0 : i32
    %c0_i32_1 = arith.constant 0 : i32
    return %c0_i32, %c0_i32_0 : i32, i32
  }
  func.func @transform_7(%arg0: i32) -> (i32, i32) {
    %c0_i32 = arith.constant 0 : i32
    %c0_i32_0 = arith.constant 0 : i32
    %c0_i32_1 = arith.constant 0 : i32
    return %c0_i32, %c0_i32_0 : i32, i32
  }
  func.func @transform_8(%arg0: i32) -> (i32, i32) {
    %c0_i32 = arith.constant 0 : i32
    %c0_i32_0 = arith.constant 0 : i32
    return %c0_i32, %arg0 : i32, i32
  }
}

</mosaic_0001>

<bundles_post_ra>
// kernel: tpu_custom_call.1
= control target key start
LH: loop header
LB: loop body
LE: loop exit
PB: predicated region body
PF: predicated region fallthrough
CT: control target
= control target key end

     0   :  { %vm88_vm0 = vcmask 1041408   ;;  %vm81_vm1 = vcmask 162816   ;;  %v920_v4 = vmov 0   ;;  %s1145_s0 = inlined_call_operand.vmem [shape: bf16[20,128], index: 0, kind: input, shape index: {}]   ;;  %s1146_s1 = inlined_call_operand.vmem [shape: bf16[32,20], index: 1, kind: input, shape index: {}]   ;;  %s1147_s2 = inlined_call_operand.vmem [shape: f32[32,1], index: 2, kind: input, shape index: {}]   ;;  %s1148_s3 = inlined_call_operand.vmem [shape: bf16[2,64,32], index: 3, kind: input, shape index: {}]   ;;  %s1149_s4 = inlined_call_operand.vmem [shape: f32[2,64,1], index: 4, kind: input, shape index: {}]   ;;  %s1150_s5 = inlined_call_operand.vmem [shape: f32[2,64,1], index: 5, kind: input, shape index: {}]   ;;  %s1151_s6 = inlined_call_operand.vmem [shape: bf16[4,32], index: 6, kind: input, shape index: {}]   ;;  %s1152_s7 = inlined_call_operand.vmem [shape: f32[4,1], index: 7, kind: input, shape index: {}]   ;;  %s1153_s8 = inlined_call_operand.hbm [shape: f32[4,128], index: 8, kind: output, shape index: {}]  }
   0x1   :  { %v864_v0 = vld [vmem:[%s1145_s0] sm:$0xff]   ;;  %v865_v1 = vld [vmem:[%s1145_s0 + $0x8] ss:$0 sps:$4 sm:$0x33]   ;;  %862 = vset.pattern.permute.xlu0 %v920_v4  ;;  %v40_v6 = vld [vmem:[%s1147_s2 + $0x10] sm:$0xff]  ;;  %863 = vset.pattern.permute.xlu1 %v920_v4 }
   0x2   :  { %v866_v2 = vld [vmem:[%s1146_s1] sm:$0xff]   ;;  %817 = vmatprep.subr.bf16.mxu0 %v864_v0  ;;  %v90_v3 = vsel %vm88_vm0, %v865_v1, 0  ;;  %v867_v7 = vld [vmem:[%s1146_s1 + $0x8] sm:$0xff]   ;;  %54 = vperm.xlu1 %863, %v40_v6   ;;  %v41_v9 = vld [vmem:[%s1147_s2 + $0x18] sm:$0xff] }
   0x3   :  { %818 = vmatpush3.bf16.msra.mxu0 %v864_v0  ;;  %821 = vmatprep.mubr.msk.bf16.mxu0 %vm81_vm1, %v866_v2  ;;  %v38_v5 = vld [vmem:[%s1147_s2] sm:$0xff]  ;;  %v39_v8 = vld [vmem:[%s1147_s2 + $0x8] sm:$0xff]  ;;  %v157_v12 = vld [vmem:[%s1149_s4 + $0x30] sm:$0xff] }
   0x4   :  { %857 = vmatprep.subr.msk.bf16.mxu0 %vm88_vm0, %v865_v1  ;;  %44 = vperm.xlu0 %862, %v38_v5   ;;  %v155_v10 = vld [vmem:[%s1149_s4 + $0x20] sm:$0xff]  ;;  %v156_v11 = vld [vmem:[%s1149_s4 + $0x28] sm:$0xff]  ;;  %v158_v13 = vld [vmem:[%s1149_s4 + $0x38] sm:$0xff] }
   0x5   :  { %v151_v14 = vld [vmem:[%s1149_s4] sm:$0xff]  ;;  %v152_v15 = vld [vmem:[%s1149_s4 + $0x8] sm:$0xff] }
   0x6   :  { %59 = vperm.xlu1 %863, %v41_v9  }
   0x7   :  { %820 = vmatpush3.bf16.msra.mxu0 %v90_v3 }
   0x8   :  { %49 = vperm.xlu0 %862, %v39_v8  }
   0xa   :  { %822 = vmatmul.mubr.msk.bf16.vlgmr.msra.gmra.mrb[0].mxu0 %vm81_vm1, %v867_v7  ;;  %186 = vperm.xlu1 %863, %v156_v11  }
   0xc   :  { %181 = vperm.xlu0 %862, %v155_v10  }
   0xe   :  { %196 = vperm.xlu1 %863, %v158_v13  }
  0x10   :  { %191 = vperm.xlu0 %862, %v157_v12  }
  0x14   :  { %161 = vperm.xlu0 %862, %v151_v14  }
  0x15   :  { %13 = vsyncpa [#allocation3], 0  ;;  %v153_v16 = vld [vmem:[%s1149_s4 + $0x10] sm:$0xff]  ;;  %166 = vperm.xlu1 %863, %v152_v15   ;;  %v154_v17 = vld [vmem:[%s1149_s4 + $0x18] sm:$0xff]  ;;  %vm219_vm2 = vcmask 261120   ;;  %vm922_vm3 = vmmov 0  }
  0x16   :  { %v350_v18 = vld [vmem:[%s1150_s5] sm:$0xff]  ;;  %v351_v19 = vld [vmem:[%s1150_s5 + $0x8] sm:$0xff]  ;;  %v352_v22 = vld [vmem:[%s1150_s5 + $0x10] sm:$0xff]  ;;  %s923_s24 = smov [#allocation2]  }
  0x17   :  { %v354_v20 = vld [vmem:[%s1150_s5 + $0x20] sm:$0xff]  ;;  %v355_v21 = vld [vmem:[%s1150_s5 + $0x28] sm:$0xff]  ;;  %v353_v23 = vld [vmem:[%s1150_s5 + $0x18] sm:$0xff] }
  0x18   :  { %171 = vperm.xlu0 %862, %v153_v16   ;;  %v356_v24 = vld [vmem:[%s1150_s5 + $0x30] sm:$0xff]  ;;  %v357_v25 = vld [vmem:[%s1150_s5 + $0x38] sm:$0xff]  ;;  %v777_v26 = vld [vmem:[%s1149_s4 + $0x60] sm:$0xff] }
  0x19   :  { %176 = vperm.xlu1 %863, %v154_v17   ;;  %v778_v27 = vld [vmem:[%s1149_s4 + $0x68] sm:$0xff]  ;;  %v779_v28 = vld [vmem:[%s1149_s4 + $0x70] sm:$0xff]  ;;  %v780_v29 = vld [vmem:[%s1149_s4 + $0x78] sm:$0xff] }
  0x1a   :  { %v773_v30 = vld [vmem:[%s1149_s4 + $0x40] sm:$0xff]  ;;  %v774_v31 = vld [vmem:[%s1149_s4 + $0x48] sm:$0xff]  ;;  %v775_v32 = vld [vmem:[%s1149_s4 + $0x50] sm:$0xff] }
  0x1b   :  { %v776_v33 = vld [vmem:[%s1149_s4 + $0x58] sm:$0xff]  ;;  %v789_v34 = vld [vmem:[%s1150_s5 + $0x40] sm:$0xff]  ;;  %v790_v35 = vld [vmem:[%s1150_s5 + $0x48] sm:$0xff]  ;;  %s743_s4 = sshll.u32 %s923_s24, 4  ;;  %s744_s4 = int_to_ptr.vmem [resolvable:$true] %s743_s4 }
  0x1c   :  { %366 = vperm.xlu0 %862, %v350_v18   ;;  %v793_v36 = vld [vmem:[%s1150_s5 + $0x60] sm:$0xff]  ;;  %v794_v37 = vld [vmem:[%s1150_s5 + $0x68] sm:$0xff]  ;;  %v791_v38 = vld [vmem:[%s1150_s5 + $0x50] sm:$0xff]  ;;  %s896_s25 = scalar_lea.vmem %s744_s4, 64  ;;  %p901_p1 = scmp.lt.s32.totalorder %s744_s4, %s744_s4 }
  0x1d   :  { %371 = vperm.xlu1 %863, %v351_v19   ;;  %v792_v39 = vld [vmem:[%s1150_s5 + $0x58] sm:$0xff]  ;;  %v795_v40 = vld [vmem:[%s1150_s5 + $0x70] sm:$0xff]  ;;  %v687_v42 = vld [vmem:[%s1152_s7] sm:$0xf]  ;;  %p897_p0 = scmp.ne.s32.totalorder %s744_s4, %s896_s25  ;;  %p902_p2 = scmp.lt.s32.totalorder %s896_s25, %s896_s25 }
  0x1e   :  { %v796_v41 = vld [vmem:[%s1150_s5 + $0x78] sm:$0xff]  ;;  %v868_v43 = vld [vmem:[%s1148_s3] sm:$0xff]   ;;  %v869_v58 = vld [vmem:[%s1148_s3 + $0x8] sm:$0xff]  }
  0x1f   :  { %829 = vmatprep.mubr.msk.bf16.mxu1 %vm219_vm2, %v868_v43  ;;  %v870_v59 = vld [vmem:[%s1148_s3 + $0x10] sm:$0xff]   ;;  %v871_v60 = vld [vmem:[%s1148_s3 + $0x18] sm:$0xff]   ;;  %v872_v61 = vld [vmem:[%s1148_s3 + $0x20] sm:$0xff]   ;;  %p903_p3 = por %p902_p2, %p901_p1 }
  0x20   :  { %390 = vperm.xlu0 %862, %v354_v20   ;;  %841 = vmatprep.mubr.msk.bf16.mxu0 %vm219_vm2, %v872_v61 }
  0x21   :  { %395 = vperm.xlu1 %863, %v355_v21   ;;  %p904_p4 = pnand %p903_p3, %p897_p0 }
  0x24   :  { %376 = vperm.xlu0 %862, %v352_v22  }
  0x25   :  { %381 = vperm.xlu1 %863, %v353_v23  }
  0x28   :  { %400 = vperm.xlu0 %862, %v356_v24  }
  0x29   :  { %405 = vperm.xlu1 %863, %v357_v25  }
  0x2c   :  { %454 = vperm.xlu0 %862, %v777_v26  }
  0x2d   :  { %459 = vperm.xlu1 %863, %v778_v27  }
  0x30   :  { %464 = vperm.xlu0 %862, %v779_v28  }
  0x31   :  { %469 = vperm.xlu1 %863, %v780_v29  }
  0x34   :  { %434 = vperm.xlu0 %862, %v773_v30  }
  0x35   :  { %439 = vperm.xlu1 %863, %v774_v31  }
  0x38   :  { %444 = vperm.xlu0 %862, %v775_v32  }
  0x39   :  { %449 = vperm.xlu1 %863, %v776_v33  }
  0x3c   :  { %638 = vperm.xlu0 %862, %v789_v34  }
  0x3d   :  { %643 = vperm.xlu1 %863, %v790_v35  }
  0x40   :  { %662 = vperm.xlu0 %862, %v793_v36  }
  0x41   :  { %667 = vperm.xlu1 %863, %v794_v37  }
  0x44   :  { %648 = vperm.xlu0 %862, %v791_v38  }
  0x45   :  { %653 = vperm.xlu1 %863, %v792_v39  }
  0x48   :  { %672 = vperm.xlu0 %862, %v795_v40  }
  0x49   :  { %677 = vperm.xlu1 %863, %v796_v41  }
  0x4c   :  { %690 = vperm.xlu0 %862, %v687_v42  }
  0x81   :  { %v55_v44 = vpop.permute.xlu1 %54 }
  0x83   :  { %v45_v45 = vpop.permute.xlu0 %44 }
  0x85   :  { %v60_v48 = vpop.permute.xlu1 %59 }
  0x87   :  { %v50_v50 = vpop.permute.xlu0 %49 }
  0x89   :  { %v187_v3 = vpop.permute.xlu1 %186 }
  0x8b   :  { %v182_v0 = vpop.permute.xlu0 %181 }
  0x8d   :  { %v197_v8 = vpop.permute.xlu1 %196 }
  0x8f   :  { %v192_v4 = vpop.permute.xlu0 %191 }
  0x93   :  { %v162_v18 = vpop.permute.xlu0 %161 }
  0x94   :  { %v167_v19 = vpop.permute.xlu1 %166 }
  0x97   :  { %v172_v25 = vpop.permute.xlu0 %171 }
  0x98   :  { %v177_v33 = vpop.permute.xlu1 %176 }
  0xdd   :  { %v823_v46 = vpop.f32.mrb[0].mxu0 }
  0xde   :  { %v126_v47 = vpop.f32.mrb[1].mxu0  ;;  %v135_v51 = vadd.f32 %v823_v46, %v55_v44 }
  0xdf   :  { %v824_v49 = vpop.f32.mrb[2].mxu0  ;;  %v127_v54 = vadd.f32 %v126_v47, %v45_v45 }
  0xe0   :  { %v138_v52 = vadd.f32 %v824_v49, %v60_v48  ;;  %v129_v53 = vpop.f32.mrb[3].mxu0 }
  0xe1   :  { %v130_v55 = vadd.f32 %v129_v53, %v50_v50 }
  0xe2   :  { %v150_v56 = vpack.c.bf16 %v138_v52, %v135_v51 }
  0xe3   :  { %v149_v57 = vpack.c.bf16 %v130_v55, %v127_v54 }
  0xe5   :  { %825 = vmatprep.subr.bf16.mxu1 %v149_v57 }
  0xe6   :  { %826 = vmatpush3.bf16.msra.mxu1 %v149_v57 }
  0xe7   :  { %827 = vmatprep.subr.bf16.mxu1 %v150_v56 }
  0xea   :  { %828 = vmatpush3.bf16.msra.mxu1 %v150_v56 }
  0xed   :  { %830 = vmatmul.mubr.msk.bf16.vlgmr.msra.gmra.mrb[0].mxu1 %vm219_vm2, %v869_v58 }
  0xee   :  { %833 = vmatprep.mubr.msk.bf16.mxu1 %vm219_vm2, %v870_v59 }
  0xf5   :  { %834 = vmatmul.mubr.msk.bf16.gmra.mrb[4].mxu1 %vm219_vm2, %v871_v60 }
 0x1c0   :  { %v831_v62 = vpop.f32.mrb[0].mxu1 }
 0x1c1   :  { %v266_v63 = vpop.f32.mrb[1].mxu1  ;;  %v275_v29 = vadd.f32 %v831_v62, %v172_v25 }
 0x1c2   :  { %v832_v1 = vpop.f32.mrb[2].mxu1  ;;  %v267_v34 = vadd.f32 %v266_v63, %v162_v18 }
 0x1c3   :  { %v269_v2 = vpop.f32.mrb[3].mxu1  ;;  %v278_v38 = vadd.f32 %v832_v1, %v177_v33 }
 0x1c4   :  { %v270_v41 = vadd.f32 %v269_v2, %v167_v19 }
 0x1c8   :  { %v835_v5 = vpop.f32.mrb[4].mxu1 }
 0x1c9   :  { %v291_v6 = vadd.f32 %v835_v5, %v192_v4  ;;  %v282_v7 = vpop.f32.mrb[5].mxu1 }
 0x1ca   :  { %v283_v9 = vadd.f32 %v282_v7, %v182_v0  ;;  %v836_v10 = vpop.f32.mrb[6].mxu1 }
 0x1cb   :  { %v303_v11 = vmul.f32 0.70710677, %v291_v6  ;;  %v294_v12 = vadd.f32 %v836_v10, %v197_v8  ;;  %v285_v13 = vpop.f32.mrb[7].mxu1  ;;  %v299_v22 = vmul.f32 0.5, %v291_v6  ;;  %v372_v10 = vpop.permute.xlu1 %371 }
 0x1cc   :  { %v301_v14 = vmul.f32 0.70710677, %v283_v9  ;;  %v286_v15 = vadd.f32 %v285_v13, %v187_v3  ;;  %v297_v26 = vmul.f32 0.5, %v283_v9  ;;  %v367_v9 = vpop.permute.xlu0 %366 }
 0x1cd   :  { %876 = verf.f32 %v303_v11  ;;  %v304_v16 = vmul.f32 0.70710677, %v294_v12  ;;  %v300_v31 = vmul.f32 0.5, %v294_v12 }
 0x1ce   :  { %878 = verf.f32 %v301_v14  ;;  %v302_v17 = vmul.f32 0.70710677, %v286_v15  ;;  %v298_v36 = vmul.f32 0.5, %v286_v15 }
 0x1cf   :  { %880 = verf.f32 %v304_v16  ;;  %v396_v14 = vpop.permute.xlu1 %395 }
 0x1d0   :  { %882 = verf.f32 %v302_v17  ;;  %v391_v13 = vpop.permute.xlu0 %390 }
 0x1d3   :  { %v382_v16 = vpop.permute.xlu1 %381 }
 0x1d4   :  { %v377_v15 = vpop.permute.xlu0 %376 }
 0x1d7   :  { %v877_v20 = vpop.eup %876 }
 0x1d8   :  { %v879_v21 = vpop.eup %878  ;;  %v311_v23 = vadd.f32 1.0, %v877_v20 }
 0x1d9   :  { %v881_v24 = vpop.eup %880  ;;  %v309_v27 = vadd.f32 1.0, %v879_v21 }
 0x1da   :  { %v883_v28 = vpop.eup %882  ;;  %v315_v30 = vmul.f32 %v311_v23, %v299_v22  ;;  %v312_v32 = vadd.f32 1.0, %v881_v24 }
 0x1db   :  { %v313_v35 = vmul.f32 %v309_v27, %v297_v26  ;;  %v310_v37 = vadd.f32 1.0, %v883_v28  ;;  %v401_v26 = vpop.permute.xlu0 %400  ;;  %v406_v27 = vpop.permute.xlu1 %405 }
 0x1dc   :  { %v319_v39 = vmul.f32 %v315_v30, %v275_v29  ;;  %v316_v40 = vmul.f32 %v312_v32, %v300_v31 }
 0x1dd   :  { %v317_v42 = vmul.f32 %v313_v35, %v267_v34  ;;  %v314_v43 = vmul.f32 %v310_v37, %v298_v36  ;;  %v873_v34 = vld [vmem:[%s1148_s3 + $0x28] sm:$0xff]   ;;  %v874_v35 = vld [vmem:[%s1148_s3 + $0x30] sm:$0xff]   ;;  %v875_v36 = vld [vmem:[%s1148_s3 + $0x38] sm:$0xff]   ;;  %v921_v37 = vmov 0.0  }
 0x1de   :  { %v320_v44 = vmul.f32 %v316_v40, %v278_v38  ;;  %849 = vmatprep.subr.bf16.mxu1 %v921_v37  ;;  %853 = vmatprep.mubr.msk.bf16.mxu1 %vm922_vm3, %v921_v37 }
 0x1df   :  { %v318_v45 = vmul.f32 %v314_v43, %v270_v41  ;;  %v455_v40 = vpop.permute.xlu0 %454  ;;  %v460_v43 = vpop.permute.xlu1 %459 }
 0x1e1   :  { %v321_v46 = vadd.f32 %v318_v45, %v317_v42 }
 0x1e3   :  { %v322_v47 = vadd.f32 %v321_v46, %v319_v39 }
 0x1e5   :  { %v323_v48 = vadd.f32 %v322_v47, %v320_v44 }
 0x1e7   :  { %v324_v49 = vrot.slane %v323_v48, 4 }
 0x1e9   :  { %v325_v50 = vadd.f32 %v324_v49, %v323_v48  ;;  %v470_v48 = vpop.permute.xlu1 %469 }
 0x1eb   :  { %v326_v51 = vrot.slane %v325_v50, 2 }
 0x1ed   :  { %v327_v52 = vadd.f32 %v326_v51, %v325_v50 }
 0x1ef   :  { %v328_v53 = vrot.slane %v327_v52, 1 }
 0x1f1   :  { %v329_v54 = vadd.f32 %v328_v53, %v327_v52 }
 0x1f3   :  { %v331_v55 = vmul.f32 0.03125, %v329_v54 }
 0x1f5   :  { %v333_v56 = vsub.f32 %v318_v45, %v331_v55  ;;  %v332_v57 = vsub.f32 %v317_v42, %v331_v55  ;;  %v334_v58 = vsub.f32 %v319_v39, %v331_v55  ;;  %v335_v59 = vsub.f32 %v320_v44, %v331_v55  ;;  %v465_v44 = vpop.permute.xlu0 %464 }
 0x1f7   :  { %v337_v60 = vmul.f32 %v333_v56, %v333_v56  ;;  %v336_v61 = vmul.f32 %v332_v57, %v332_v57  ;;  %v338_v62 = vmul.f32 %v334_v58, %v334_v58  ;;  %v339_v0 = vmul.f32 %v335_v59, %v335_v59 }
 0x1f9   :  { %v340_v63 = vadd.f32 %v337_v60, %v336_v61 }
 0x1fb   :  { %v341_v1 = vadd.f32 %v340_v63, %v338_v62 }
 0x1fd   :  { %v342_v2 = vadd.f32 %v341_v1, %v339_v0 }
 0x1ff   :  { %v343_v3 = vrot.slane %v342_v2, 4 }
 0x201   :  { %v344_v4 = vadd.f32 %v343_v3, %v342_v2 }
 0x203   :  { %v345_v5 = vrot.slane %v344_v4, 2 }
 0x205   :  { %v346_v6 = vadd.f32 %v345_v5, %v344_v4 }
 0x207   :  { %v347_v7 = vrot.slane %v346_v6, 1 }
 0x209   :  { %v348_v8 = vadd.f32 %v347_v7, %v346_v6 }
 0x20b   :  { %v349_v11 = vmul.f32 0.03125, %v348_v8 }
 0x20d   :  { %v358_v12 = vadd.f32 1e-05, %v349_v11 }
 0x20f   :  { %884 = vrsqrt.f32 %v358_v12 }
 0x219   :  { %v885_v17 = vpop.eup %884 }
 0x21a   :  { %v360_v18 = vmul.f32 %v885_v17, %v332_v57  ;;  %v361_v19 = vmul.f32 %v885_v17, %v333_v56  ;;  %v362_v20 = vmul.f32 %v885_v17, %v334_v58  ;;  %v363_v21 = vmul.f32 %v885_v17, %v335_v59  ;;  %v435_v58 = vpop.permute.xlu0 %434  ;;  %v440_v59 = vpop.permute.xlu1 %439 }
 0x21c   :  { %v384_v22 = vmul.f32 %v367_v9, %v360_v18  ;;  %v385_v23 = vmul.f32 %v372_v10, %v361_v19  ;;  %v386_v24 = vmul.f32 %v377_v15, %v362_v20  ;;  %v387_v25 = vmul.f32 %v382_v16, %v363_v21 }
 0x21e   :  { %v408_v28 = vadd.f32 %v391_v13, %v384_v22  ;;  %v409_v29 = vadd.f32 %v396_v14, %v385_v23  ;;  %v410_v30 = vadd.f32 %v401_v26, %v386_v24  ;;  %v411_v31 = vadd.f32 %v406_v27, %v387_v25  ;;  %v445_v1 = vpop.permute.xlu0 %444  ;;  %v450_v9 = vpop.permute.xlu1 %449 }
 0x220   :  { %v421_v32 = vpack.c.bf16 %v409_v29, %v408_v28  ;;  %v422_v33 = vpack.c.bf16 %v411_v31, %v410_v30 }
 0x222   :  { %837 = vmatprep.subr.bf16.mxu0 %v421_v32 }
 0x223   :  { %838 = vmatpush3.bf16.msra.mxu0 %v421_v32 }
 0x224   :  { %839 = vmatprep.subr.bf16.mxu0 %v422_v33 }
 0x227   :  { %840 = vmatpush3.bf16.msra.mxu0 %v422_v33 }
 0x22a   :  { %842 = vmatmul.mubr.msk.bf16.vlgmr.msra.gmra.mrb[4].mxu0 %vm219_vm2, %v873_v34 }
 0x22b   :  { %845 = vmatprep.mubr.msk.bf16.mxu0 %vm219_vm2, %v874_v35 }
 0x232   :  { %846 = vmatmul.mubr.msk.bf16.gmra.mrb[8].mxu0 %vm219_vm2, %v875_v36 }
 0x2fd   :  { %v843_v38 = vpop.f32.mrb[4].mxu0 }
 0x2fe   :  { %v538_v39 = vpop.f32.mrb[5].mxu0  ;;  %v547_v5 = vadd.f32 %v843_v38, %v445_v1 }
 0x2ff   :  { %v844_v41 = vpop.f32.mrb[6].mxu0  ;;  %v539_v10 = vadd.f32 %v538_v39, %v435_v58 }
 0x300   :  { %v541_v42 = vpop.f32.mrb[7].mxu0  ;;  %v550_v14 = vadd.f32 %v844_v41, %v450_v9 }
 0x301   :  { %v542_v17 = vadd.f32 %v541_v42, %v440_v59 }
 0x305   :  { %v847_v45 = vpop.f32.mrb[8].mxu0 }
 0x306   :  { %v563_v46 = vadd.f32 %v847_v45, %v465_v44  ;;  %v554_v47 = vpop.f32.mrb[9].mxu0 }
 0x307   :  { %v555_v49 = vadd.f32 %v554_v47, %v455_v40  ;;  %v848_v50 = vpop.f32.mrb[10].mxu0 }
 0x308   :  { %v575_v51 = vmul.f32 0.70710677, %v563_v46  ;;  %v566_v52 = vadd.f32 %v848_v50, %v470_v48  ;;  %v557_v53 = vpop.f32.mrb[11].mxu0  ;;  %v571_v62 = vmul.f32 0.5, %v563_v46  ;;  %v639_v50 = vpop.permute.xlu0 %638 }
 0x309   :  { %v573_v54 = vmul.f32 0.70710677, %v555_v49  ;;  %v558_v55 = vadd.f32 %v557_v53, %v460_v43  ;;  %v569_v2 = vmul.f32 0.5, %v555_v49 }
 0x30a   :  { %886 = verf.f32 %v575_v51  ;;  %v576_v56 = vmul.f32 0.70710677, %v566_v52  ;;  %v572_v7 = vmul.f32 0.5, %v566_v52  ;;  %v644_v51 = vpop.permute.xlu1 %643 }
 0x30b   :  { %888 = verf.f32 %v573_v54  ;;  %v574_v57 = vmul.f32 0.70710677, %v558_v55  ;;  %v570_v12 = vmul.f32 0.5, %v558_v55 }
 0x30c   :  { %890 = verf.f32 %v576_v56  ;;  %v663_v54 = vpop.permute.xlu0 %662 }
 0x30d   :  { %892 = verf.f32 %v574_v57 }
 0x30e   :  { %v668_v55 = vpop.permute.xlu1 %667 }
 0x310   :  { %v649_v56 = vpop.permute.xlu0 %648 }
 0x312   :  { %v654_v57 = vpop.permute.xlu1 %653 }
 0x314   :  { %v887_v60 = vpop.eup %886 }
 0x315   :  { %v889_v61 = vpop.eup %888  ;;  %v583_v63 = vadd.f32 1.0, %v887_v60 }
 0x316   :  { %v891_v0 = vpop.eup %890  ;;  %v581_v3 = vadd.f32 1.0, %v889_v61 }
 0x317   :  { %v893_v4 = vpop.eup %892  ;;  %v587_v6 = vmul.f32 %v583_v63, %v571_v62  ;;  %v584_v8 = vadd.f32 1.0, %v891_v0 }
 0x318   :  { %v585_v11 = vmul.f32 %v581_v3, %v569_v2  ;;  %v582_v13 = vadd.f32 1.0, %v893_v4  ;;  %v673_v3 = vpop.permute.xlu0 %672  ;;  %v678_v4 = vpop.permute.xlu1 %677 }
 0x319   :  { %v591_v15 = vmul.f32 %v587_v6, %v547_v5  ;;  %v588_v16 = vmul.f32 %v584_v8, %v572_v7 }
 0x31a   :  { %v589_v18 = vmul.f32 %v585_v11, %v539_v10  ;;  %v586_v19 = vmul.f32 %v582_v13, %v570_v12  ;;  %v684_v11 = vld [vmem:[%s1151_s6] sm:$0x3] }
 0x31b   :  { %v592_v20 = vmul.f32 %v588_v16, %v550_v14 }
 0x31c   :  { %v590_v21 = vmul.f32 %v586_v19, %v542_v17  ;;  %v691_v12 = vpop.permute.xlu0 %690 }
 0x31e   :  { %v593_v22 = vadd.f32 %v590_v21, %v589_v18 }
 0x320   :  { %v594_v23 = vadd.f32 %v593_v22, %v591_v15 }
 0x322   :  { %v595_v24 = vadd.f32 %v594_v23, %v592_v20 }
 0x324   :  { %v596_v25 = vrot.slane %v595_v24, 4 }
 0x326   :  { %v597_v26 = vadd.f32 %v596_v25, %v595_v24 }
 0x328   :  { %v598_v27 = vrot.slane %v597_v26, 2 }
 0x32a   :  { %v599_v28 = vadd.f32 %v598_v27, %v597_v26 }
 0x32c   :  { %v600_v29 = vrot.slane %v599_v28, 1 }
 0x32e   :  { %v601_v30 = vadd.f32 %v600_v29, %v599_v28 }
 0x330   :  { %v602_v31 = vmul.f32 0.03125, %v601_v30 }
 0x332   :  { %v603_v32 = vsub.f32 %v589_v18, %v602_v31  ;;  %v604_v33 = vsub.f32 %v590_v21, %v602_v31  ;;  %v605_v34 = vsub.f32 %v591_v15, %v602_v31  ;;  %v606_v35 = vsub.f32 %v592_v20, %v602_v31 }
 0x334   :  { %v607_v36 = vmul.f32 %v603_v32, %v603_v32  ;;  %v608_v38 = vmul.f32 %v604_v33, %v604_v33  ;;  %v609_v39 = vmul.f32 %v605_v34, %v605_v34  ;;  %v610_v41 = vmul.f32 %v606_v35, %v606_v35 }
 0x336   :  { %v611_v40 = vadd.f32 %v608_v38, %v607_v36 }
 0x338   :  { %v612_v42 = vadd.f32 %v611_v40, %v609_v39 }
 0x33a   :  { %v613_v43 = vadd.f32 %v612_v42, %v610_v41 }
 0x33c   :  { %v614_v44 = vrot.slane %v613_v43, 4 }
 0x33e   :  { %v615_v45 = vadd.f32 %v614_v44, %v613_v43 }
 0x340   :  { %v616_v46 = vrot.slane %v615_v45, 2 }
 0x342   :  { %v617_v47 = vadd.f32 %v616_v46, %v615_v45 }
 0x344   :  { %v618_v48 = vrot.slane %v617_v47, 1 }
 0x346   :  { %v619_v49 = vadd.f32 %v618_v48, %v617_v47 }
 0x348   :  { %v620_v52 = vmul.f32 0.03125, %v619_v49 }
 0x34a   :  { %v630_v53 = vadd.f32 1e-05, %v620_v52 }
 0x34c   :  { %894 = vrsqrt.f32 %v630_v53 }
 0x356   :  { %v895_v58 = vpop.eup %894 }
 0x357   :  { %v633_v59 = vmul.f32 %v895_v58, %v604_v33  ;;  %v632_v60 = vmul.f32 %v895_v58, %v603_v32  ;;  %v634_v61 = vmul.f32 %v895_v58, %v605_v34  ;;  %v635_v62 = vmul.f32 %v895_v58, %v606_v35 }
 0x359   :  { %v656_v63 = vmul.f32 %v639_v50, %v632_v60  ;;  %v657_v0 = vmul.f32 %v644_v51, %v633_v59  ;;  %v658_v1 = vmul.f32 %v649_v56, %v634_v61  ;;  %v659_v2 = vmul.f32 %v654_v57, %v635_v62 }
 0x35b   :  { %v680_v5 = vadd.f32 %v663_v54, %v656_v63  ;;  %v681_v6 = vadd.f32 %v668_v55, %v657_v0  ;;  %v682_v7 = vadd.f32 %v673_v3, %v658_v1  ;;  %v683_v8 = vadd.f32 %v678_v4, %v659_v2 }
 0x35d   :  { %v685_v9 = vpack.c.bf16 %v681_v6, %v680_v5  ;;  %v686_v10 = vpack.c.bf16 %v683_v8, %v682_v7 }
 0x35f   :  { %850 = vmatpush3.bf16.msra.mxu1 %v685_v9 }
 0x360   :  { %851 = vmatprep.subr.bf16.mxu1 %v921_v37 }
 0x363   :  { %852 = vmatpush3.bf16.msra.mxu1 %v686_v10 }
 0x366   :  { %854 = vmatmul.mubr.msk.bf16.vlgmr.msra.gmra.mrb[8].mxu1 %vm219_vm2, %v684_v11 }
 0x439   :  { %v730_v13 = vpop.f32.mrb[8].mxu1 }
 0x43a   :  { %v731_v14 = vadd.f32 %v730_v13, %v691_v12  ;;  %v855_v15 = vpop.f32.mrb[9].mxu1 }
 0x43b   :  { %v733_v16 = vpop.f32.mrb[10].mxu1 }
 0x43c   :  { %736 = vst [vmem:[#allocation2] sm:$0xf] %v731_v14  ;;  %v856_v17 = vpop.f32.mrb[11].mxu1 }
 0x43d   :  { %907 = shalt.err (!%p904_p4)
}
 0x43e   :  { %s908_s26 = scalar_lea.hbm %s1153_s8, 64 }
 0x43f   :  { %p909_p5 = scmp.ne.s32.totalorder %s1153_s8, %s908_s26  ;;  %p912_p6 = scmp.lt.u32.totalorder %s908_s26, %s1153_s8 }
 0x441   :  { %p914_p7 = pnand %p912_p6, %p909_p5 }
 0x443   :  { %917 = shalt.err (!%p914_p7)
}
 0x444   :  { %746 = dma.vmem_to_hbm [thread:$0]  %s744_s4, 64, %s1153_s8, [#allocation3]  }
 0x445   :  { %918 = dma.done.wait [#allocation3], 64  }
 0x446   :  { %919 = vsyncadd [#allocation3], 4294967232 }
 0x447   :  { %750 = vsyncpa [#allocation3], 1 }

</bundles_post_ra>
